<compile_context>
chip_gen: v7x
topology: tpu7x:2x2x1
jax: 0.10.0
libtpu: 0.0.40
codegen_flags: <defaults>
</compile_context>

<pallas_src>
import functools

import jax
import jax.numpy as jnp
from jax.experimental import pallas as pl
from jax.experimental.pallas import tpu as pltpu


def _resblock_kernel(H, W, B, Cin, Cout, project, PAD,
                     x_ref, w1_ref, b1_ref, w2_ref, b2_ref, w3_ref, b3_ref,
                     mask_ref, out_ref, pad_ref, col_ref):
    """One batch chunk (B images) per grid step, channels-major flat layout.

    Computes  relu( relu(conv2(relu(conv1(x)))) + skip(x) )
    where skip(x) = relu(conv1x1(x)) if Cin != Cout else x.
    """
    M = B * H * W
    shifts = [(dy - 1) * W + (dx - 1) for dy in range(3) for dx in range(3)]
    masks = mask_ref[...]                       # (9, M) f32, values in {0, 1}

    def conv3x3(src_c, w_ref):
        # pad_ref[:src_c, PAD:PAD+M] holds the (src_c, M) feature map (bf16).
        # Tap (dy,dx) is the window shifted by (dy-1)*W + (dx-1); out-of-image
        # taps are masked to zero (this also discards whatever garbage sits in
        # the never-initialized pad columns).  One aligned store per tap into
        # the im2col scratch, then a single MXU matmul with f32 accumulation.
        for k, s in enumerate(shifts):
            piece = pad_ref[:src_c, PAD + s:PAD + s + M]      # (src_c, M) bf16
            keep = masks[k:k + 1] > 0.5                       # (1, M) bool
            col_ref[k * src_c:(k + 1) * src_c, :] = jnp.where(
                keep, piece, jnp.zeros_like(piece))
        return jnp.dot(w_ref[...], col_ref[:9 * src_c, :],
                       preferred_element_type=jnp.float32)    # (Cout, M) f32

    # ---- conv1: 3x3, padding=1, + bias + ReLU -------------------------------
    pad_ref[:Cin, PAD:PAD + M] = x_ref[...]                   # lane-aligned copy
    h1 = jnp.maximum(conv3x3(Cin, w1_ref) + b1_ref[...], 0.0)

    # ---- conv2: 3x3, padding=1, + bias + ReLU -------------------------------
    pad_ref[:Cout, PAD:PAD + M] = h1.astype(pad_ref.dtype)    # bf16 for the MXU
    h2 = jnp.maximum(conv3x3(Cout, w2_ref) + b2_ref[...], 0.0)

    # ---- skip path ----------------------------------------------------------
    if project:      # Cin != Cout: 1x1 conv + bias + ReLU
        skip = jnp.maximum(
            jnp.dot(w3_ref[...], x_ref[...], preferred_element_type=jnp.float32)
            + b3_ref[...], 0.0)
    else:            # identity skip (Cin == Cout)
        skip = x_ref[...].astype(jnp.float32)

    # Lane-dense output store: (Cout, M) with M a multiple of 128.
    out_ref[...] = jnp.maximum(h2 + skip, 0.0).astype(out_ref.dtype)


def resblock_forward(x_nchw, params, *, batch_norm=False, batch_block=1):
    """Pallas implementation of ResBlock.forward.  x_nchw: (N, Cin, H, W) f32.

    batch_block = images per grid step.  With the small demo batch we keep it
    at 1 so the grid has >= 2 "parallel" steps (v7x 2-TC split); raise it for
    larger batches to amortize the ~0.35us/step pipeline overhead.
    """
    if batch_norm:
        # TODO(synk): training-mode BatchNorm2d (per-batch statistics + running
        # stat updates) not implemented; module default batch_norm=False covered.
        raise NotImplementedError("batch_norm=True path not implemented")

    N, Cin, H, W = x_nchw.shape
    Cout = params["w1"].shape[-1]
    B = batch_block
    assert N % B == 0, "batch_block must divide N"
    M = B * H * W
    assert M % 128 == 0 or N == B, "block spatial size should be lane-aligned"
    project = (Cin != Cout)
    PAD = ((W + 1 + 127) // 128) * 128          # lane-aligned halo for the taps
    CM = max(Cin, Cout)

    # Channels-major, spatially flattened, bf16 activations (M in the lane dim).
    x_cm = jnp.transpose(x_nchw, (1, 0, 2, 3)).reshape(
        Cin, N * H * W).astype(jnp.bfloat16)

    # Stacked / transposed weights for the single im2col matmuls (bf16).
    w1s = jnp.transpose(params["w1"], (3, 0, 1, 2)).reshape(
        Cout, 9 * Cin).astype(jnp.bfloat16)          # (Cout, 9*Cin)
    w2s = jnp.transpose(params["w2"], (3, 0, 1, 2)).reshape(
        Cout, 9 * Cout).astype(jnp.bfloat16)         # (Cout, 9*Cout)
    w3t = jnp.transpose(params["w1x1"], (1, 0)).astype(jnp.bfloat16)  # (Cout, Cin)
    b1 = params["b1"].reshape(Cout, 1).astype(jnp.float32)
    b2 = params["b2"].reshape(Cout, 1).astype(jnp.float32)
    b3 = params["b1x1"].reshape(Cout, 1).astype(jnp.float32)

    # Tap-validity masks over the flattened spatial index (9, M), values {0,1}.
    m_idx = jnp.arange(M)
    yy = (m_idx // W) % H
    xx = m_idx % W
    mlist = []
    for dy in range(3):
        for dx in range(3):
            ys, xs = yy + dy - 1, xx + dx - 1
            mlist.append((ys >= 0) & (ys < H) & (xs >= 0) & (xs < W))
    masks = jnp.stack(mlist).astype(jnp.float32)     # (9, M)

    kernel = functools.partial(_resblock_kernel, H, W, B, Cin, Cout, project, PAD)

    grid_spec = pltpu.PrefetchScalarGridSpec(
        num_scalar_prefetch=0,
        grid=(N // B,),
        in_specs=[
            pl.BlockSpec((Cin, M), lambda n: (0, n)),         # x (bf16)
            pl.BlockSpec((Cout, 9 * Cin), lambda n: (0, 0)),  # conv1 weights
            pl.BlockSpec((Cout, 1), lambda n: (0, 0)),        # conv1 bias
            pl.BlockSpec((Cout, 9 * Cout), lambda n: (0, 0)), # conv2 weights
            pl.BlockSpec((Cout, 1), lambda n: (0, 0)),        # conv2 bias
            pl.BlockSpec((Cout, Cin), lambda n: (0, 0)),      # 1x1 weights
            pl.BlockSpec((Cout, 1), lambda n: (0, 0)),        # 1x1 bias
            pl.BlockSpec((9, M), lambda n: (0, 0)),           # tap masks
        ],
        out_specs=pl.BlockSpec((Cout, M), lambda n: (0, n)),
        scratch_shapes=[
            pltpu.VMEM((CM, 2 * PAD + M), jnp.bfloat16),      # padded feature map
            pltpu.VMEM((9 * CM, M), jnp.bfloat16),            # im2col matrix
        ],
    )

    out_cm = pl.pallas_call(
        kernel,
        out_shape=jax.ShapeDtypeStruct((Cout, N * H * W), jnp.float32),
        grid_spec=grid_spec,
        compiler_params=pltpu.CompilerParams(
            dimension_semantics=("parallel",)),
    )(x_cm, w1s, b1, w2s, b2, w3t, b3, masks)

    # Layout plumbing back to NCHW in plain JAX.
    return jnp.transpose(out_cm.reshape(Cout, N, H, W), (1, 0, 2, 3))


def init_params(key, in_size, out_size):
    """Deterministic PyTorch-like uniform init (kaiming-style bounds)."""
    ks = jax.random.split(key, 6)

    def u(k, shape, fan_in):
        bound = 1.0 / (fan_in ** 0.5)
        return jax.random.uniform(k, shape, jnp.float32, -bound, bound)

    return {
        "w1": u(ks[0], (3, 3, in_size, out_size), 9 * in_size),
        "b1": u(ks[1], (out_size,), 9 * in_size),
        "w2": u(ks[2], (3, 3, out_size, out_size), 9 * out_size),
        "b2": u(ks[3], (out_size,), 9 * out_size),
        "w1x1": u(ks[4], (in_size, out_size), in_size),
        "b1x1": u(ks[5], (out_size,), in_size),
    }


def resblock_reference(x_nchw, params):
    """Plain-JAX f32 reference (same math as the PyTorch module, batch_norm=False)."""
    N, Cin, H, W = x_nchw.shape
    Cout = params["w1"].shape[-1]
    dn = ("NHWC", "HWIO", "NHWC")
    x = jnp.transpose(x_nchw, (0, 2, 3, 1)).astype(jnp.float32)
    h = jax.lax.conv_general_dilated(x, params["w1"], (1, 1), "SAME",
                                     dimension_numbers=dn) + params["b1"]
    h = jax.nn.relu(h)
    h = jax.lax.conv_general_dilated(h, params["w2"], (1, 1), "SAME",
                                     dimension_numbers=dn) + params["b2"]
    h = jax.nn.relu(h)
    if Cin != Cout:
        skip = jax.lax.conv_general_dilated(
            x, params["w1x1"].reshape(1, 1, Cin, Cout), (1, 1), "SAME",
            dimension_numbers=dn) + params["b1x1"]
        skip = jax.nn.relu(skip)
    else:
        skip = x
    out = jax.nn.relu(h + skip)
    return jnp.transpose(out, (0, 3, 1, 2))


def resblock_reference_mixed(x_nchw, params):
    """Reference mirroring the kernel's precision policy: bf16 conv operands,
    f32 accumulation (incl. bf16 storage of relu(conv1))."""
    bf = lambda a: a.astype(jnp.bfloat16).astype(jnp.float32)
    N, Cin, H, W = x_nchw.shape
    Cout = params["w1"].shape[-1]
    dn = ("NHWC", "HWIO", "NHWC")
    x = bf(jnp.transpose(x_nchw, (0, 2, 3, 1)).astype(jnp.float32))
    h = jax.lax.conv_general_dilated(x, bf(params["w1"]), (1, 1), "SAME",
                                     dimension_numbers=dn) + params["b1"]
    h = bf(jax.nn.relu(h))
    h = jax.lax.conv_general_dilated(h, bf(params["w2"]), (1, 1), "SAME",
                                     dimension_numbers=dn) + params["b2"]
    h = jax.nn.relu(h)
    if Cin != Cout:
        skip = jax.lax.conv_general_dilated(
            x, bf(params["w1x1"]).reshape(1, 1, Cin, Cout), (1, 1), "SAME",
            dimension_numbers=dn) + params["b1x1"]
        skip = jax.nn.relu(skip)
    else:
        skip = x
    out = jax.nn.relu(h + skip)
    return jnp.transpose(out, (0, 3, 1, 2))


if __name__ == "__main__":
    key = jax.random.PRNGKey(0)
    k_x, k_p = jax.random.split(key)

    # ResBlock(in_size=4, out_size=8) on a (2, 4, 16, 16) NCHW input.
    N, Cin, Cout, H, W = 2, 4, 8, 16, 16
    x = jax.random.normal(k_x, (N, Cin, H, W), jnp.float32)
    params = init_params(k_p, Cin, Cout)

    out = jax.block_until_ready(resblock_forward(x, params))
    ref_mixed = jax.block_until_ready(resblock_reference_mixed(x, params))
    ref_f32 = jax.block_until_ready(resblock_reference(x, params))

    assert out.shape == (N, Cout, H, W), out.shape
    # Tight check against the precision-matched (bf16 operand / f32 accum) reference.
    assert jnp.allclose(out, ref_mixed, atol=5e-3, rtol=5e-3), \
        float(jnp.max(jnp.abs(out - ref_mixed)))
    # Loose sanity check against the pure-f32 module semantics.
    assert jnp.allclose(out, ref_f32, atol=5e-2, rtol=5e-2), \
        float(jnp.max(jnp.abs(out - ref_f32)))
    print("KERNEL_OK")
</pallas_src>

<mosaic_0001>
module attributes {stable_mosaic.version = 11 : i64} {
  func.func @_resblock_kernel(%arg0: i32, %arg1: memref<4x256xbf16, #tpu.memory_space<vmem>>, %arg2: memref<8x36xbf16, #tpu.memory_space<vmem>>, %arg3: memref<8x1xf32, #tpu.memory_space<vmem>>, %arg4: memref<8x72xbf16, #tpu.memory_space<vmem>>, %arg5: memref<8x1xf32, #tpu.memory_space<vmem>>, %arg6: memref<8x4xbf16, #tpu.memory_space<vmem>>, %arg7: memref<8x1xf32, #tpu.memory_space<vmem>>, %arg8: memref<9x256xf32, #tpu.memory_space<vmem>>, %arg9: memref<8x256xf32, #tpu.memory_space<vmem>>, %arg10: memref<8x512xbf16, #tpu.memory_space<vmem>>, %arg11: memref<72x256xbf16, #tpu.memory_space<vmem>>) attributes {dimension_semantics = [#tpu.dimension_semantics<parallel>], iteration_bounds = array<i64: 2>, scalar_prefetch = 0 : i64, scratch_operands = 2 : i64, tpu.core_type = #tpu.core_type<tc>, window_params = [{transform_indices = @transform_0, window_bounds = array<i64: 4, 256>}, {pipeline_mode = #tpu.pipeline_mode<synchronous>, transform_indices = @transform_1, window_bounds = array<i64: 8, 36>}, {pipeline_mode = #tpu.pipeline_mode<synchronous>, transform_indices = @transform_2, window_bounds = array<i64: 8, 1>}, {pipeline_mode = #tpu.pipeline_mode<synchronous>, transform_indices = @transform_3, window_bounds = array<i64: 8, 72>}, {pipeline_mode = #tpu.pipeline_mode<synchronous>, transform_indices = @transform_4, window_bounds = array<i64: 8, 1>}, {pipeline_mode = #tpu.pipeline_mode<synchronous>, transform_indices = @transform_5, window_bounds = array<i64: 8, 4>}, {pipeline_mode = #tpu.pipeline_mode<synchronous>, transform_indices = @transform_6, window_bounds = array<i64: 8, 1>}, {pipeline_mode = #tpu.pipeline_mode<synchronous>, transform_indices = @transform_7, window_bounds = array<i64: 9, 256>}, {transform_indices = @transform_8, window_bounds = array<i64: 8, 256>}]} {
    %c0 = arith.constant 0 : index
    %c0_0 = arith.constant 0 : index
    %0 = vector.load %arg8[%c0, %c0_0] : memref<9x256xf32, #tpu.memory_space<vmem>>, vector<9x256xf32>
    %c0_1 = arith.constant 0 : index
    %c0_2 = arith.constant 0 : index
    %1 = vector.load %arg1[%c0_1, %c0_2] : memref<4x256xbf16, #tpu.memory_space<vmem>>, vector<4x256xbf16>
    %c0_3 = arith.constant 0 : index
    %c128 = arith.constant 128 : index
    %2 = vector.load %arg10[%c0_3, %c128] : memref<8x512xbf16, #tpu.memory_space<vmem>>, vector<4x256xbf16>
    tpu.vector_store %arg10[%c0_3, %c128], %1 {strides = array<i32>} : memref<8x512xbf16, #tpu.memory_space<vmem>>, vector<4x256xbf16>,
    %c0_4 = arith.constant 0 : index
    %c111 = arith.constant 111 : index
    %3 = vector.load %arg10[%c0_4, %c111] : memref<8x512xbf16, #tpu.memory_space<vmem>>, vector<4x256xbf16>
    %4 = vector.extract_strided_slice %0 {offsets = [0, 0], sizes = [1, 256], strides = [1, 1]} : vector<9x256xf32> to vector<1x256xf32>
    %cst = arith.constant 5.000000e-01 : f32
    %5 = vector.broadcast %cst : f32 to vector<1x256xf32>
    %6 = arith.cmpf ogt, %4, %5 : vector<1x256xf32>
    %cst_5 = arith.constant 0.000000e+00 : bf16
    %7 = vector.broadcast %cst_5 : bf16 to vector<4x256xbf16>
    %8 = vector.shape_cast %6 : vector<1x256xi1> to vector<1x256xi1>
    %9 = vector.broadcast %8 : vector<1x256xi1> to vector<4x256xi1>
    %10 = arith.select %9, %3, %7 : vector<4x256xi1>, vector<4x256xbf16>
    %c0_6 = arith.constant 0 : index
    %c0_7 = arith.constant 0 : index
    %11 = vector.load %arg11[%c0_6, %c0_7] : memref<72x256xbf16, #tpu.memory_space<vmem>>, vector<4x256xbf16>
    tpu.vector_store %arg11[%c0_6, %c0_7], %10 {strides = array<i32>} : memref<72x256xbf16, #tpu.memory_space<vmem>>, vector<4x256xbf16>,
    %c0_8 = arith.constant 0 : index
    %c112 = arith.constant 112 : index
    %12 = vector.load %arg10[%c0_8, %c112] : memref<8x512xbf16, #tpu.memory_space<vmem>>, vector<4x256xbf16>
    %13 = vector.extract_strided_slice %0 {offsets = [1, 0], sizes = [1, 256], strides = [1, 1]} : vector<9x256xf32> to vector<1x256xf32>
    %cst_9 = arith.constant 5.000000e-01 : f32
    %14 = vector.broadcast %cst_9 : f32 to vector<1x256xf32>
    %15 = arith.cmpf ogt, %13, %14 : vector<1x256xf32>
    %cst_10 = arith.constant 0.000000e+00 : bf16
    %16 = vector.broadcast %cst_10 : bf16 to vector<4x256xbf16>
    %17 = vector.shape_cast %15 : vector<1x256xi1> to vector<1x256xi1>
    %18 = vector.broadcast %17 : vector<1x256xi1> to vector<4x256xi1>
    %19 = arith.select %18, %12, %16 : vector<4x256xi1>, vector<4x256xbf16>
    %c4 = arith.constant 4 : index
    %c0_11 = arith.constant 0 : index
    %20 = vector.load %arg11[%c4, %c0_11] : memref<72x256xbf16, #tpu.memory_space<vmem>>, vector<4x256xbf16>
    tpu.vector_store %arg11[%c4, %c0_11], %19 {strides = array<i32>} : memref<72x256xbf16, #tpu.memory_space<vmem>>, vector<4x256xbf16>,
    %c0_12 = arith.constant 0 : index
    %c113 = arith.constant 113 : index
    %21 = vector.load %arg10[%c0_12, %c113] : memref<8x512xbf16, #tpu.memory_space<vmem>>, vector<4x256xbf16>
    %22 = vector.extract_strided_slice %0 {offsets = [2, 0], sizes = [1, 256], strides = [1, 1]} : vector<9x256xf32> to vector<1x256xf32>
    %cst_13 = arith.constant 5.000000e-01 : f32
    %23 = vector.broadcast %cst_13 : f32 to vector<1x256xf32>
    %24 = arith.cmpf ogt, %22, %23 : vector<1x256xf32>
    %cst_14 = arith.constant 0.000000e+00 : bf16
    %25 = vector.broadcast %cst_14 : bf16 to vector<4x256xbf16>
    %26 = vector.shape_cast %24 : vector<1x256xi1> to vector<1x256xi1>
    %27 = vector.broadcast %26 : vector<1x256xi1> to vector<4x256xi1>
    %28 = arith.select %27, %21, %25 : vector<4x256xi1>, vector<4x256xbf16>
    %c8 = arith.constant 8 : index
    %c0_15 = arith.constant 0 : index
    %29 = vector.load %arg11[%c8, %c0_15] : memref<72x256xbf16, #tpu.memory_space<vmem>>, vector<4x256xbf16>
    tpu.vector_store %arg11[%c8, %c0_15], %28 {strides = array<i32>} : memref<72x256xbf16, #tpu.memory_space<vmem>>, vector<4x256xbf16>,
    %c0_16 = arith.constant 0 : index
    %c127 = arith.constant 127 : index
    %30 = vector.load %arg10[%c0_16, %c127] : memref<8x512xbf16, #tpu.memory_space<vmem>>, vector<4x256xbf16>
    %31 = vector.extract_strided_slice %0 {offsets = [3, 0], sizes = [1, 256], strides = [1, 1]} : vector<9x256xf32> to vector<1x256xf32>
    %cst_17 = arith.constant 5.000000e-01 : f32
    %32 = vector.broadcast %cst_17 : f32 to vector<1x256xf32>
    %33 = arith.cmpf ogt, %31, %32 : vector<1x256xf32>
    %cst_18 = arith.constant 0.000000e+00 : bf16
    %34 = vector.broadcast %cst_18 : bf16 to vector<4x256xbf16>
    %35 = vector.shape_cast %33 : vector<1x256xi1> to vector<1x256xi1>
    %36 = vector.broadcast %35 : vector<1x256xi1> to vector<4x256xi1>
    %37 = arith.select %36, %30, %34 : vector<4x256xi1>, vector<4x256xbf16>
    %c12 = arith.constant 12 : index
    %c0_19 = arith.constant 0 : index
    %38 = vector.load %arg11[%c12, %c0_19] : memref<72x256xbf16, #tpu.memory_space<vmem>>, vector<4x256xbf16>
    tpu.vector_store %arg11[%c12, %c0_19], %37 {strides = array<i32>} : memref<72x256xbf16, #tpu.memory_space<vmem>>, vector<4x256xbf16>,
    %c0_20 = arith.constant 0 : index
    %c128_21 = arith.constant 128 : index
    %39 = vector.load %arg10[%c0_20, %c128_21] : memref<8x512xbf16, #tpu.memory_space<vmem>>, vector<4x256xbf16>
    %40 = vector.extract_strided_slice %0 {offsets = [4, 0], sizes = [1, 256], strides = [1, 1]} : vector<9x256xf32> to vector<1x256xf32>
    %cst_22 = arith.constant 5.000000e-01 : f32
    %41 = vector.broadcast %cst_22 : f32 to vector<1x256xf32>
    %42 = arith.cmpf ogt, %40, %41 : vector<1x256xf32>
    %cst_23 = arith.constant 0.000000e+00 : bf16
    %43 = vector.broadcast %cst_23 : bf16 to vector<4x256xbf16>
    %44 = vector.shape_cast %42 : vector<1x256xi1> to vector<1x256xi1>
    %45 = vector.broadcast %44 : vector<1x256xi1> to vector<4x256xi1>
    %46 = arith.select %45, %39, %43 : vector<4x256xi1>, vector<4x256xbf16>
    %c16 = arith.constant 16 : index
    %c0_24 = arith.constant 0 : index
    %47 = vector.load %arg11[%c16, %c0_24] : memref<72x256xbf16, #tpu.memory_space<vmem>>, vector<4x256xbf16>
    tpu.vector_store %arg11[%c16, %c0_24], %46 {strides = array<i32>} : memref<72x256xbf16, #tpu.memory_space<vmem>>, vector<4x256xbf16>,
    %c0_25 = arith.constant 0 : index
    %c129 = arith.constant 129 : index
    %48 = vector.load %arg10[%c0_25, %c129] : memref<8x512xbf16, #tpu.memory_space<vmem>>, vector<4x256xbf16>
    %49 = vector.extract_strided_slice %0 {offsets = [5, 0], sizes = [1, 256], strides = [1, 1]} : vector<9x256xf32> to vector<1x256xf32>
    %cst_26 = arith.constant 5.000000e-01 : f32
    %50 = vector.broadcast %cst_26 : f32 to vector<1x256xf32>
    %51 = arith.cmpf ogt, %49, %50 : vector<1x256xf32>
    %cst_27 = arith.constant 0.000000e+00 : bf16
    %52 = vector.broadcast %cst_27 : bf16 to vector<4x256xbf16>
    %53 = vector.shape_cast %51 : vector<1x256xi1> to vector<1x256xi1>
    %54 = vector.broadcast %53 : vector<1x256xi1> to vector<4x256xi1>
    %55 = arith.select %54, %48, %52 : vector<4x256xi1>, vector<4x256xbf16>
    %c20 = arith.constant 20 : index
    %c0_28 = arith.constant 0 : index
    %56 = vector.load %arg11[%c20, %c0_28] : memref<72x256xbf16, #tpu.memory_space<vmem>>, vector<4x256xbf16>
    tpu.vector_store %arg11[%c20, %c0_28], %55 {strides = array<i32>} : memref<72x256xbf16, #tpu.memory_space<vmem>>, vector<4x256xbf16>,
    %c0_29 = arith.constant 0 : index
    %c143 = arith.constant 143 : index
    %57 = vector.load %arg10[%c0_29, %c143] : memref<8x512xbf16, #tpu.memory_space<vmem>>, vector<4x256xbf16>
    %58 = vector.extract_strided_slice %0 {offsets = [6, 0], sizes = [1, 256], strides = [1, 1]} : vector<9x256xf32> to vector<1x256xf32>
    %cst_30 = arith.constant 5.000000e-01 : f32
    %59 = vector.broadcast %cst_30 : f32 to vector<1x256xf32>
    %60 = arith.cmpf ogt, %58, %59 : vector<1x256xf32>
    %cst_31 = arith.constant 0.000000e+00 : bf16
    %61 = vector.broadcast %cst_31 : bf16 to vector<4x256xbf16>
    %62 = vector.shape_cast %60 : vector<1x256xi1> to vector<1x256xi1>
    %63 = vector.broadcast %62 : vector<1x256xi1> to vector<4x256xi1>
    %64 = arith.select %63, %57, %61 : vector<4x256xi1>, vector<4x256xbf16>
    %c24 = arith.constant 24 : index
    %c0_32 = arith.constant 0 : index
    %65 = vector.load %arg11[%c24, %c0_32] : memref<72x256xbf16, #tpu.memory_space<vmem>>, vector<4x256xbf16>
    tpu.vector_store %arg11[%c24, %c0_32], %64 {strides = array<i32>} : memref<72x256xbf16, #tpu.memory_space<vmem>>, vector<4x256xbf16>,
    %c0_33 = arith.constant 0 : index
    %c144 = arith.constant 144 : index
    %66 = vector.load %arg10[%c0_33, %c144] : memref<8x512xbf16, #tpu.memory_space<vmem>>, vector<4x256xbf16>
    %67 = vector.extract_strided_slice %0 {offsets = [7, 0], sizes = [1, 256], strides = [1, 1]} : vector<9x256xf32> to vector<1x256xf32>
    %cst_34 = arith.constant 5.000000e-01 : f32
    %68 = vector.broadcast %cst_34 : f32 to vector<1x256xf32>
    %69 = arith.cmpf ogt, %67, %68 : vector<1x256xf32>
    %cst_35 = arith.constant 0.000000e+00 : bf16
    %70 = vector.broadcast %cst_35 : bf16 to vector<4x256xbf16>
    %71 = vector.shape_cast %69 : vector<1x256xi1> to vector<1x256xi1>
    %72 = vector.broadcast %71 : vector<1x256xi1> to vector<4x256xi1>
    %73 = arith.select %72, %66, %70 : vector<4x256xi1>, vector<4x256xbf16>
    %c28 = arith.constant 28 : index
    %c0_36 = arith.constant 0 : index
    %74 = vector.load %arg11[%c28, %c0_36] : memref<72x256xbf16, #tpu.memory_space<vmem>>, vector<4x256xbf16>
    tpu.vector_store %arg11[%c28, %c0_36], %73 {strides = array<i32>} : memref<72x256xbf16, #tpu.memory_space<vmem>>, vector<4x256xbf16>,
    %c0_37 = arith.constant 0 : index
    %c145 = arith.constant 145 : index
    %75 = vector.load %arg10[%c0_37, %c145] : memref<8x512xbf16, #tpu.memory_space<vmem>>, vector<4x256xbf16>
    %76 = vector.extract_strided_slice %0 {offsets = [8, 0], sizes = [1, 256], strides = [1, 1]} : vector<9x256xf32> to vector<1x256xf32>
    %cst_38 = arith.constant 5.000000e-01 : f32
    %77 = vector.broadcast %cst_38 : f32 to vector<1x256xf32>
    %78 = arith.cmpf ogt, %76, %77 : vector<1x256xf32>
    %cst_39 = arith.constant 0.000000e+00 : bf16
    %79 = vector.broadcast %cst_39 : bf16 to vector<4x256xbf16>
    %80 = vector.shape_cast %78 : vector<1x256xi1> to vector<1x256xi1>
    %81 = vector.broadcast %80 : vector<1x256xi1> to vector<4x256xi1>
    %82 = arith.select %81, %75, %79 : vector<4x256xi1>, vector<4x256xbf16>
    %c32 = arith.constant 32 : index
    %c0_40 = arith.constant 0 : index
    %83 = vector.load %arg11[%c32, %c0_40] : memref<72x256xbf16, #tpu.memory_space<vmem>>, vector<4x256xbf16>
    tpu.vector_store %arg11[%c32, %c0_40], %82 {strides = array<i32>} : memref<72x256xbf16, #tpu.memory_space<vmem>>, vector<4x256xbf16>,
    %c0_41 = arith.constant 0 : index
    %c0_42 = arith.constant 0 : index
    %84 = vector.load %arg2[%c0_41, %c0_42] : memref<8x36xbf16, #tpu.memory_space<vmem>>, vector<8x36xbf16>
    %c0_43 = arith.constant 0 : index
    %c0_44 = arith.constant 0 : index
    %85 = vector.load %arg11[%c0_43, %c0_44] : memref<72x256xbf16, #tpu.memory_space<vmem>>, vector<36x256xbf16>
    %cst_45 = arith.constant dense<0.000000e+00> : vector<8x256xf32>
    %86 = tpu.matmul %84, %85, %cst_45 {dimension_numbers = #tpu.dot_dimension_numbers<[1], [0], [0], [1], [0, 0, 1, 1], [], []>} : vector<8x36xbf16>, vector<36x256xbf16>, vector<8x256xf32> -> vector<8x256xf32>
    %c0_46 = arith.constant 0 : index
    %c0_47 = arith.constant 0 : index
    %87 = vector.load %arg3[%c0_46, %c0_47] : memref<8x1xf32, #tpu.memory_space<vmem>>, vector<8x1xf32>
    %88 = vector.broadcast %87 : vector<8x1xf32> to vector<8x256xf32>
    %89 = arith.addf %86, %88 : vector<8x256xf32>
    %cst_48 = arith.constant 0.000000e+00 : f32
    %90 = vector.broadcast %cst_48 : f32 to vector<8x256xf32>
    %91 = arith.maximumf %89, %90 : vector<8x256xf32>
    %92 = arith.truncf %91 : vector<8x256xf32> to vector<8x256xbf16>
    %c0_49 = arith.constant 0 : index
    %c128_50 = arith.constant 128 : index
    %93 = vector.load %arg10[%c0_49, %c128_50] : memref<8x512xbf16, #tpu.memory_space<vmem>>, vector<8x256xbf16>
    tpu.vector_store %arg10[%c0_49, %c128_50], %92 {strides = array<i32>} : memref<8x512xbf16, #tpu.memory_space<vmem>>, vector<8x256xbf16>,
    %c0_51 = arith.constant 0 : index
    %c111_52 = arith.constant 111 : index
    %94 = vector.load %arg10[%c0_51, %c111_52] : memref<8x512xbf16, #tpu.memory_space<vmem>>, vector<8x256xbf16>
    %95 = vector.extract_strided_slice %0 {offsets = [0, 0], sizes = [1, 256], strides = [1, 1]} : vector<9x256xf32> to vector<1x256xf32>
    %cst_53 = arith.constant 5.000000e-01 : f32
    %96 = vector.broadcast %cst_53 : f32 to vector<1x256xf32>
    %97 = arith.cmpf ogt, %95, %96 : vector<1x256xf32>
    %cst_54 = arith.constant 0.000000e+00 : bf16
    %98 = vector.broadcast %cst_54 : bf16 to vector<8x256xbf16>
    %99 = vector.shape_cast %97 : vector<1x256xi1> to vector<1x256xi1>
    %100 = vector.broadcast %99 : vector<1x256xi1> to vector<8x256xi1>
    %101 = arith.select %100, %94, %98 : vector<8x256xi1>, vector<8x256xbf16>
    %c0_55 = arith.constant 0 : index
    %c0_56 = arith.constant 0 : index
    %102 = vector.load %arg11[%c0_55, %c0_56] : memref<72x256xbf16, #tpu.memory_space<vmem>>, vector<8x256xbf16>
    tpu.vector_store %arg11[%c0_55, %c0_56], %101 {strides = array<i32>} : memref<72x256xbf16, #tpu.memory_space<vmem>>, vector<8x256xbf16>,
    %c0_57 = arith.constant 0 : index
    %c112_58 = arith.constant 112 : index
    %103 = vector.load %arg10[%c0_57, %c112_58] : memref<8x512xbf16, #tpu.memory_space<vmem>>, vector<8x256xbf16>
    %104 = vector.extract_strided_slice %0 {offsets = [1, 0], sizes = [1, 256], strides = [1, 1]} : vector<9x256xf32> to vector<1x256xf32>
    %cst_59 = arith.constant 5.000000e-01 : f32
    %105 = vector.broadcast %cst_59 : f32 to vector<1x256xf32>
    %106 = arith.cmpf ogt, %104, %105 : vector<1x256xf32>
    %cst_60 = arith.constant 0.000000e+00 : bf16
    %107 = vector.broadcast %cst_60 : bf16 to vector<8x256xbf16>
    %108 = vector.shape_cast %106 : vector<1x256xi1> to vector<1x256xi1>
    %109 = vector.broadcast %108 : vector<1x256xi1> to vector<8x256xi1>
    %110 = arith.select %109, %103, %107 : vector<8x256xi1>, vector<8x256xbf16>
    %c8_61 = arith.constant 8 : index
    %c0_62 = arith.constant 0 : index
    %111 = vector.load %arg11[%c8_61, %c0_62] : memref<72x256xbf16, #tpu.memory_space<vmem>>, vector<8x256xbf16>
    tpu.vector_store %arg11[%c8_61, %c0_62], %110 {strides = array<i32>} : memref<72x256xbf16, #tpu.memory_space<vmem>>, vector<8x256xbf16>,
    %c0_63 = arith.constant 0 : index
    %c113_64 = arith.constant 113 : index
    %112 = vector.load %arg10[%c0_63, %c113_64] : memref<8x512xbf16, #tpu.memory_space<vmem>>, vector<8x256xbf16>
    %113 = vector.extract_strided_slice %0 {offsets = [2, 0], sizes = [1, 256], strides = [1, 1]} : vector<9x256xf32> to vector<1x256xf32>
    %cst_65 = arith.constant 5.000000e-01 : f32
    %114 = vector.broadcast %cst_65 : f32 to vector<1x256xf32>
    %115 = arith.cmpf ogt, %113, %114 : vector<1x256xf32>
    %cst_66 = arith.constant 0.000000e+00 : bf16
    %116 = vector.broadcast %cst_66 : bf16 to vector<8x256xbf16>
    %117 = vector.shape_cast %115 : vector<1x256xi1> to vector<1x256xi1>
    %118 = vector.broadcast %117 : vector<1x256xi1> to vector<8x256xi1>
    %119 = arith.select %118, %112, %116 : vector<8x256xi1>, vector<8x256xbf16>
    %c16_67 = arith.constant 16 : index
    %c0_68 = arith.constant 0 : index
    %120 = vector.load %arg11[%c16_67, %c0_68] : memref<72x256xbf16, #tpu.memory_space<vmem>>, vector<8x256xbf16>
    tpu.vector_store %arg11[%c16_67, %c0_68], %119 {strides = array<i32>} : memref<72x256xbf16, #tpu.memory_space<vmem>>, vector<8x256xbf16>,
    %c0_69 = arith.constant 0 : index
    %c127_70 = arith.constant 127 : index
    %121 = vector.load %arg10[%c0_69, %c127_70] : memref<8x512xbf16, #tpu.memory_space<vmem>>, vector<8x256xbf16>
    %122 = vector.extract_strided_slice %0 {offsets = [3, 0], sizes = [1, 256], strides = [1, 1]} : vector<9x256xf32> to vector<1x256xf32>
    %cst_71 = arith.constant 5.000000e-01 : f32
    %123 = vector.broadcast %cst_71 : f32 to vector<1x256xf32>
    %124 = arith.cmpf ogt, %122, %123 : vector<1x256xf32>
    %cst_72 = arith.constant 0.000000e+00 : bf16
    %125 = vector.broadcast %cst_72 : bf16 to vector<8x256xbf16>
    %126 = vector.shape_cast %124 : vector<1x256xi1> to vector<1x256xi1>
    %127 = vector.broadcast %126 : vector<1x256xi1> to vector<8x256xi1>
    %128 = arith.select %127, %121, %125 : vector<8x256xi1>, vector<8x256xbf16>
    %c24_73 = arith.constant 24 : index
    %c0_74 = arith.constant 0 : index
    %129 = vector.load %arg11[%c24_73, %c0_74] : memref<72x256xbf16, #tpu.memory_space<vmem>>, vector<8x256xbf16>
    tpu.vector_store %arg11[%c24_73, %c0_74], %128 {strides = array<i32>} : memref<72x256xbf16, #tpu.memory_space<vmem>>, vector<8x256xbf16>,
    %c0_75 = arith.constant 0 : index
    %c128_76 = arith.constant 128 : index
    %130 = vector.load %arg10[%c0_75, %c128_76] : memref<8x512xbf16, #tpu.memory_space<vmem>>, vector<8x256xbf16>
    %131 = vector.extract_strided_slice %0 {offsets = [4, 0], sizes = [1, 256], strides = [1, 1]} : vector<9x256xf32> to vector<1x256xf32>
    %cst_77 = arith.constant 5.000000e-01 : f32
    %132 = vector.broadcast %cst_77 : f32 to vector<1x256xf32>
    %133 = arith.cmpf ogt, %131, %132 : vector<1x256xf32>
    %cst_78 = arith.constant 0.000000e+00 : bf16
    %134 = vector.broadcast %cst_78 : bf16 to vector<8x256xbf16>
    %135 = vector.shape_cast %133 : vector<1x256xi1> to vector<1x256xi1>
    %136 = vector.broadcast %135 : vector<1x256xi1> to vector<8x256xi1>
    %137 = arith.select %136, %130, %134 : vector<8x256xi1>, vector<8x256xbf16>
    %c32_79 = arith.constant 32 : index
    %c0_80 = arith.constant 0 : index
    %138 = vector.load %arg11[%c32_79, %c0_80] : memref<72x256xbf16, #tpu.memory_space<vmem>>, vector<8x256xbf16>
    tpu.vector_store %arg11[%c32_79, %c0_80], %137 {strides = array<i32>} : memref<72x256xbf16, #tpu.memory_space<vmem>>, vector<8x256xbf16>,
    %c0_81 = arith.constant 0 : index
    %c129_82 = arith.constant 129 : index
    %139 = vector.load %arg10[%c0_81, %c129_82] : memref<8x512xbf16, #tpu.memory_space<vmem>>, vector<8x256xbf16>
    %140 = vector.extract_strided_slice %0 {offsets = [5, 0], sizes = [1, 256], strides = [1, 1]} : vector<9x256xf32> to vector<1x256xf32>
    %cst_83 = arith.constant 5.000000e-01 : f32
    %141 = vector.broadcast %cst_83 : f32 to vector<1x256xf32>
    %142 = arith.cmpf ogt, %140, %141 : vector<1x256xf32>
    %cst_84 = arith.constant 0.000000e+00 : bf16
    %143 = vector.broadcast %cst_84 : bf16 to vector<8x256xbf16>
    %144 = vector.shape_cast %142 : vector<1x256xi1> to vector<1x256xi1>
    %145 = vector.broadcast %144 : vector<1x256xi1> to vector<8x256xi1>
    %146 = arith.select %145, %139, %143 : vector<8x256xi1>, vector<8x256xbf16>
    %c40 = arith.constant 40 : index
    %c0_85 = arith.constant 0 : index
    %147 = vector.load %arg11[%c40, %c0_85] : memref<72x256xbf16, #tpu.memory_space<vmem>>, vector<8x256xbf16>
    tpu.vector_store %arg11[%c40, %c0_85], %146 {strides = array<i32>} : memref<72x256xbf16, #tpu.memory_space<vmem>>, vector<8x256xbf16>,
    %c0_86 = arith.constant 0 : index
    %c143_87 = arith.constant 143 : index
    %148 = vector.load %arg10[%c0_86, %c143_87] : memref<8x512xbf16, #tpu.memory_space<vmem>>, vector<8x256xbf16>
    %149 = vector.extract_strided_slice %0 {offsets = [6, 0], sizes = [1, 256], strides = [1, 1]} : vector<9x256xf32> to vector<1x256xf32>
    %cst_88 = arith.constant 5.000000e-01 : f32
    %150 = vector.broadcast %cst_88 : f32 to vector<1x256xf32>
    %151 = arith.cmpf ogt, %149, %150 : vector<1x256xf32>
    %cst_89 = arith.constant 0.000000e+00 : bf16
    %152 = vector.broadcast %cst_89 : bf16 to vector<8x256xbf16>
    %153 = vector.shape_cast %151 : vector<1x256xi1> to vector<1x256xi1>
    %154 = vector.broadcast %153 : vector<1x256xi1> to vector<8x256xi1>
    %155 = arith.select %154, %148, %152 : vector<8x256xi1>, vector<8x256xbf16>
    %c48 = arith.constant 48 : index
    %c0_90 = arith.constant 0 : index
    %156 = vector.load %arg11[%c48, %c0_90] : memref<72x256xbf16, #tpu.memory_space<vmem>>, vector<8x256xbf16>
    tpu.vector_store %arg11[%c48, %c0_90], %155 {strides = array<i32>} : memref<72x256xbf16, #tpu.memory_space<vmem>>, vector<8x256xbf16>,
    %c0_91 = arith.constant 0 : index
    %c144_92 = arith.constant 144 : index
    %157 = vector.load %arg10[%c0_91, %c144_92] : memref<8x512xbf16, #tpu.memory_space<vmem>>, vector<8x256xbf16>
    %158 = vector.extract_strided_slice %0 {offsets = [7, 0], sizes = [1, 256], strides = [1, 1]} : vector<9x256xf32> to vector<1x256xf32>
    %cst_93 = arith.constant 5.000000e-01 : f32
    %159 = vector.broadcast %cst_93 : f32 to vector<1x256xf32>
    %160 = arith.cmpf ogt, %158, %159 : vector<1x256xf32>
    %cst_94 = arith.constant 0.000000e+00 : bf16
    %161 = vector.broadcast %cst_94 : bf16 to vector<8x256xbf16>
    %162 = vector.shape_cast %160 : vector<1x256xi1> to vector<1x256xi1>
    %163 = vector.broadcast %162 : vector<1x256xi1> to vector<8x256xi1>
    %164 = arith.select %163, %157, %161 : vector<8x256xi1>, vector<8x256xbf16>
    %c56 = arith.constant 56 : index
    %c0_95 = arith.constant 0 : index
    %165 = vector.load %arg11[%c56, %c0_95] : memref<72x256xbf16, #tpu.memory_space<vmem>>, vector<8x256xbf16>
    tpu.vector_store %arg11[%c56, %c0_95], %164 {strides = array<i32>} : memref<72x256xbf16, #tpu.memory_space<vmem>>, vector<8x256xbf16>,
    %c0_96 = arith.constant 0 : index
    %c145_97 = arith.constant 145 : index
    %166 = vector.load %arg10[%c0_96, %c145_97] : memref<8x512xbf16, #tpu.memory_space<vmem>>, vector<8x256xbf16>
    %167 = vector.extract_strided_slice %0 {offsets = [8, 0], sizes = [1, 256], strides = [1, 1]} : vector<9x256xf32> to vector<1x256xf32>
    %cst_98 = arith.constant 5.000000e-01 : f32
    %168 = vector.broadcast %cst_98 : f32 to vector<1x256xf32>
    %169 = arith.cmpf ogt, %167, %168 : vector<1x256xf32>
    %cst_99 = arith.constant 0.000000e+00 : bf16
    %170 = vector.broadcast %cst_99 : bf16 to vector<8x256xbf16>
    %171 = vector.shape_cast %169 : vector<1x256xi1> to vector<1x256xi1>
    %172 = vector.broadcast %171 : vector<1x256xi1> to vector<8x256xi1>
    %173 = arith.select %172, %166, %170 : vector<8x256xi1>, vector<8x256xbf16>
    %c64 = arith.constant 64 : index
    %c0_100 = arith.constant 0 : index
    %174 = vector.load %arg11[%c64, %c0_100] : memref<72x256xbf16, #tpu.memory_space<vmem>>, vector<8x256xbf16>
    tpu.vector_store %arg11[%c64, %c0_100], %173 {strides = array<i32>} : memref<72x256xbf16, #tpu.memory_space<vmem>>, vector<8x256xbf16>,
    %c0_101 = arith.constant 0 : index
    %c0_102 = arith.constant 0 : index
    %175 = vector.load %arg4[%c0_101, %c0_102] : memref<8x72xbf16, #tpu.memory_space<vmem>>, vector<8x72xbf16>
    %c0_103 = arith.constant 0 : index
    %c0_104 = arith.constant 0 : index
    %176 = vector.load %arg11[%c0_103, %c0_104] : memref<72x256xbf16, #tpu.memory_space<vmem>>, vector<72x256xbf16>
    %cst_105 = arith.constant dense<0.000000e+00> : vector<8x256xf32>
    %177 = tpu.matmul %175, %176, %cst_105 {dimension_numbers = #tpu.dot_dimension_numbers<[1], [0], [0], [1], [0, 0, 1, 1], [], []>} : vector<8x72xbf16>, vector<72x256xbf16>, vector<8x256xf32> -> vector<8x256xf32>
    %c0_106 = arith.constant 0 : index
    %c0_107 = arith.constant 0 : index
    %178 = vector.load %arg5[%c0_106, %c0_107] : memref<8x1xf32, #tpu.memory_space<vmem>>, vector<8x1xf32>
    %179 = vector.broadcast %178 : vector<8x1xf32> to vector<8x256xf32>
    %180 = arith.addf %177, %179 : vector<8x256xf32>
    %cst_108 = arith.constant 0.000000e+00 : f32
    %181 = vector.broadcast %cst_108 : f32 to vector<8x256xf32>
    %182 = arith.maximumf %180, %181 : vector<8x256xf32>
    %c0_109 = arith.constant 0 : index
    %c0_110 = arith.constant 0 : index
    %183 = vector.load %arg6[%c0_109, %c0_110] : memref<8x4xbf16, #tpu.memory_space<vmem>>, vector<8x4xbf16>
    %c0_111 = arith.constant 0 : index
    %c0_112 = arith.constant 0 : index
    %184 = vector.load %arg1[%c0_111, %c0_112] : memref<4x256xbf16, #tpu.memory_space<vmem>>, vector<4x256xbf16>
    %cst_113 = arith.constant dense<0.000000e+00> : vector<8x256xf32>
    %185 = tpu.matmul %183, %184, %cst_113 {dimension_numbers = #tpu.dot_dimension_numbers<[1], [0], [0], [1], [0, 0, 1, 1], [], []>} : vector<8x4xbf16>, vector<4x256xbf16>, vector<8x256xf32> -> vector<8x256xf32>
    %c0_114 = arith.constant 0 : index
    %c0_115 = arith.constant 0 : index
    %186 = vector.load %arg7[%c0_114, %c0_115] : memref<8x1xf32, #tpu.memory_space<vmem>>, vector<8x1xf32>
    %187 = vector.broadcast %186 : vector<8x1xf32> to vector<8x256xf32>
    %188 = arith.addf %185, %187 : vector<8x256xf32>
    %cst_116 = arith.constant 0.000000e+00 : f32
    %189 = vector.broadcast %cst_116 : f32 to vector<8x256xf32>
    %190 = arith.maximumf %188, %189 : vector<8x256xf32>
    %191 = arith.addf %182, %190 : vector<8x256xf32>
    %cst_117 = arith.constant 0.000000e+00 : f32
    %192 = vector.broadcast %cst_117 : f32 to vector<8x256xf32>
    %193 = arith.maximumf %191, %192 : vector<8x256xf32>
    %c0_118 = arith.constant 0 : index
    %c0_119 = arith.constant 0 : index
    %194 = vector.load %arg9[%c0_118, %c0_119] : memref<8x256xf32, #tpu.memory_space<vmem>>, vector<8x256xf32>
    tpu.vector_store %arg9[%c0_118, %c0_119], %193 {strides = array<i32>} : memref<8x256xf32, #tpu.memory_space<vmem>>, vector<8x256xf32>,
    return
  }
  func.func @transform_0(%arg0: i32) -> (i32, i32) {
    %c0_i32 = arith.constant 0 : i32
    %c0_i32_0 = arith.constant 0 : i32
    return %c0_i32, %arg0 : i32, i32
  }
  func.func @transform_1(%arg0: i32) -> (i32, i32) {
    %c0_i32 = arith.constant 0 : i32
    %c0_i32_0 = arith.constant 0 : i32
    %c0_i32_1 = arith.constant 0 : i32
    return %c0_i32, %c0_i32_0 : i32, i32
  }
  func.func @transform_2(%arg0: i32) -> (i32, i32) {
    %c0_i32 = arith.constant 0 : i32
    %c0_i32_0 = arith.constant 0 : i32
    %c0_i32_1 = arith.constant 0 : i32
    return %c0_i32, %c0_i32_0 : i32, i32
  }
  func.func @transform_3(%arg0: i32) -> (i32, i32) {
    %c0_i32 = arith.constant 0 : i32
    %c0_i32_0 = arith.constant 0 : i32
    %c0_i32_1 = arith.constant 0 : i32
    return %c0_i32, %c0_i32_0 : i32, i32
  }
  func.func @transform_4(%arg0: i32) -> (i32, i32) {
    %c0_i32 = arith.constant 0 : i32
    %c0_i32_0 = arith.constant 0 : i32
    %c0_i32_1 = arith.constant 0 : i32
    return %c0_i32, %c0_i32_0 : i32, i32
  }
  func.func @transform_5(%arg0: i32) -> (i32, i32) {
    %c0_i32 = arith.constant 0 : i32
    %c0_i32_0 = arith.constant 0 : i32
    %c0_i32_1 = arith.constant 0 : i32
    return %c0_i32, %c0_i32_0 : i32, i32
  }
  func.func @transform_6(%arg0: i32) -> (i32, i32) {
    %c0_i32 = arith.constant 0 : i32
    %c0_i32_0 = arith.constant 0 : i32
    %c0_i32_1 = arith.constant 0 : i32
    return %c0_i32, %c0_i32_0 : i32, i32
  }
  func.func @transform_7(%arg0: i32) -> (i32, i32) {
    %c0_i32 = arith.constant 0 : i32
    %c0_i32_0 = arith.constant 0 : i32
    %c0_i32_1 = arith.constant 0 : i32
    return %c0_i32, %c0_i32_0 : i32, i32
  }
  func.func @transform_8(%arg0: i32) -> (i32, i32) {
    %c0_i32 = arith.constant 0 : i32
    %c0_i32_0 = arith.constant 0 : i32
    return %c0_i32, %arg0 : i32, i32
  }
}

</mosaic_0001>

<bundles_post_ra>
// kernel: tpu_custom_call.1
= control target key start
LH: loop header
LB: loop body
LE: loop exit
PB: predicated region body
PF: predicated region fallthrough
CT: control target
= control target key end

     0   :  { %13 = vsyncpa [#allocation5], 0  ;;  %s1752_s0 = inlined_call_operand.vmem [shape: bf16[4,512], index: 0, kind: input, shape index: {}]   ;;  %s1753_s1 = inlined_call_operand.vmem [shape: bf16[8,36], index: 1, kind: input, shape index: {}]   ;;  %s1754_s2 = inlined_call_operand.vmem [shape: f32[8,1], index: 2, kind: input, shape index: {}]   ;;  %s1755_s3 = inlined_call_operand.vmem [shape: bf16[8,72], index: 3, kind: input, shape index: {}]   ;;  %s1756_s4 = inlined_call_operand.vmem [shape: f32[8,1], index: 4, kind: input, shape index: {}]   ;;  %s1757_s5 = inlined_call_operand.vmem [shape: bf16[8,4], index: 5, kind: input, shape index: {}]   ;;  %s1758_s6 = inlined_call_operand.vmem [shape: f32[8,1], index: 6, kind: input, shape index: {}]   ;;  %s1759_s7 = inlined_call_operand.vmem [shape: f32[9,256], index: 7, kind: input, shape index: {}]   ;;  %s1760_s8 = inlined_call_operand.hbm [shape: f32[8,512], index: 8, kind: output, shape index: {}]  }
   0x1   :  { %15 = vsyncpa [#allocation5 + $0x1], 0  ;;  %s1348_s27 = smov 0   ;;  %s1350_s28 = smov 0  }
   0x2   :  { %s1352_s29 = smov 0   ;;  %s1354_s30 = smov 0  }
   0x3 LB: > { %s1369_s9 = sadd.s32 4294967295, %s1291_s30   ;;  %s1132_s10 = sadd.s32 4294967294, %s1291_s30   ;;  %s1291_s30 = sphi %s1354_s30, %s1817_s30   ;;  %s1287_s29 = sphi %s1352_s29, %s1816_s29   ;;  %s1283_s28 = sphi %s1350_s28, %s1815_s28   ;;  %s1279_s27 = sphi %s1348_s27, %s1814_s27  }
   0x4   : > { %s1373_s11 = sadd.s32 1, %s1291_s30   ;;  %s201_s12 = sadd.s32 1, %s1287_s29 }
   0x5   : > { %s198_s13 = ssub.s32 %s1291_s30, %s1373_s11  ;;  %p211_p0 = scmp.ne.s32.totalorder %s1287_s29, %s1283_s28 }
   0x6   : > { %p199_p1 = scmp.eq.s32.totalorder %s198_s13, 0  ;;  %p212_p2 = scmp.eq.s32.totalorder %s1369_s9, 1 }
   0x7   : > { %p217_p3 = scmp.ne.s32.totalorder %s1283_s28, %s1279_s27  ;;  %p218_p4 = scmp.eq.s32.totalorder %s1132_s10, 1 }
   0x8   : > { %s1384_s14 = scalar_select %p199_p1, %s1287_s29, %s201_s12  }
   0x9   : > { %p1386_p5 = por %p212_p2, %p211_p0  ;;  %p1390_p6 = por %p218_p4, %p217_p3 }
   0xa   : > { %p1135_p7 = scmp.ge.s32.totalorder %s1291_s30, 1  ;;  %p266_p8 = scmp.lt.s32.totalorder %s1291_s30, 3 }
   0xc   : > { %p267_p9 = pnand %p1135_p7, %p266_p8 }
   0xd   : > { %v310_v0 = vld [vmem:[%s1759_s7] sm:$0xff] (!%p267_p9)  ;;  %v311_v1 = vld [vmem:[%s1759_s7 + $0x8] sm:$0xff] (!%p267_p9)  ;;  %v331_v2 = vlaneseq (!%p267_p9)  ;;  %v312_v3 = vld [vmem:[%s1759_s7 + $0x10] sm:$0x1] (!%p267_p9)  ;;  %v1293_v4 = vmov (!%p267_p9), 0   ;;  %s1137_s23 = sshll.u32 (!%p267_p9), %s1369_s9, 1 }
   0xe   : > { %270 = sbr.rel (%p267_p9) target bundleno = 925 (0x39d), region = 52  ;;  %vm327_vm0 = vcmp.gt.f32.partialorder (!%p267_p9), %v310_v0, 0.5  ;;  %vm328_vm1 = vcmp.gt.f32.partialorder (!%p267_p9), %v311_v1, 0.5  ;;  %716 = vmatprep.mubr.bf16.mxu0 (!%p267_p9), %v1293_v4  ;;  %1219 = vset.pattern.permute.xlu0 (!%p267_p9), %v1293_v4  ;;  %vm600_vm2 = vcmp.gt.f32.partialorder (!%p267_p9), %v312_v3, 0.5  ;;  %p301_p10 = scmp.lt.s32.totalorder (!%p267_p9), %s1137_s23, 3 }
   0xf   : > { %v1407_v5 = vshrl.u32 (!%p267_p9), %v331_v2, 7  ;;  %971 = vmatprep.mubr.bf16.mxu1 (!%p267_p9), %v1293_v4  ;;  %1220 = vset.pattern.permute.xlu1 (!%p267_p9), %v1293_v4  ;;  %v329_v6 = vsel (!%p267_p9), %vm327_vm0, 1, %v1293_v4  ;;  %v330_v7 = vsel (!%p267_p9), %vm328_vm1, 1, %v1293_v4  ;;  %v1414_v8 = vsel (!%p267_p9), %vm600_vm2, 1, %v1293_v4  ;;  %s1294_s12 = smov (!%p267_p9), 112   ;;  %s1295_s18 = smov (!%p267_p9), 111  }
  0x10   : > { %v313_v36 = vld [vmem:[%s1759_s7 + $0x18] sm:$0x1] (!%p267_p9)  ;;  %s1296_s19 = smov (!%p267_p9), 127   ;;  %s1297_s20 = smov (!%p267_p9), 113  }
  0x11   : > { %v370_v9 = vsub.s32 (!%p267_p9), 1, %v1407_v5  ;;  %v481_v10 = vsub.s32 (!%p267_p9), 4, %v1407_v5  ;;  %v1419_v11 = vsub.s32 (!%p267_p9), 0, %v1407_v5  ;;  %v444_v12 = vsub.s32 (!%p267_p9), 3, %v1407_v5  ;;  %s1298_s21 = smov (!%p267_p9), 1   ;;  %s1299_s22 = smov (!%p267_p9), 16  }
  0x12   : > { %v408_v13 = vsub.s32 (!%p267_p9), 2, %v1407_v5  ;;  %v496_v14 = vsub.s32 (!%p267_p9), 5, %v1407_v5  ;;  %v532_v15 = vsub.s32 (!%p267_p9), 6, %v1407_v5  ;;  %v566_v16 = vsub.s32 (!%p267_p9), 7, %v1407_v5  ;;  %s1170_s26 = sshll.u32 (!%p267_p9), %s1369_s9, 8  ;;  %s1302_s9 = smov (!%p267_p9), [#allocation4]  }
  0x13   : > { %v371_v17 = vrot.slane (!%p267_p9), %v329_v6, %v370_v9  ;;  %v375_v18 = vrot.slane (!%p267_p9), %v330_v7, %v370_v9  ;;  %v482_v19 = vrot.slane (!%p267_p9), %v329_v6, %v481_v10  ;;  %v486_v20 = vrot.slane (!%p267_p9), %v330_v7, %v481_v10 }
  0x14   : > { %v334_v21 = vrot.slane (!%p267_p9), %v329_v6, %v1419_v11  ;;  %v338_v22 = vrot.slane (!%p267_p9), %v330_v7, %v1419_v11  ;;  %v445_v23 = vrot.slane (!%p267_p9), %v329_v6, %v444_v12  ;;  %v449_v24 = vrot.slane (!%p267_p9), %v330_v7, %v444_v12 }
  0x15   : > { %s1819_s23 = smov (!%p301_p10, %s1137_s23), 3  ;;  %vm376_vm3 = vcmp.eq.s32.totalorder %v371_v17, 1  ;;  %vm377_vm4 = vcmp.eq.s32.totalorder %v375_v18, 1  ;;  %vm487_vm5 = vcmp.eq.s32.totalorder %v482_v19, 1  ;;  %vm488_vm6 = vcmp.eq.s32.totalorder %v486_v20, 1 }
  0x16   : > { %vm378_vm7 = vmpackc.low %vm377_vm4, %vm376_vm3  ;;  %vm1429_vm8 = vcmp.eq.s32.totalorder %v334_v21, 1  ;;  %vm1433_vm9 = vcmp.eq.s32.totalorder %v338_v22, 1  ;;  %vm450_vm10 = vcmp.eq.s32.totalorder %v445_v23, 1  ;;  %vm451_vm11 = vcmp.eq.s32.totalorder %v449_v24, 1  ;;  %s1138_s24 = sshll.u32 %s1819_s23, 1  ;;  %s1300_s23 = smov 15  }
  0x17   : > { %v379_v27 = vsel %vm378_vm7, 65537, %v1293_v4  ;;  %vm1438_vm12 = vmpackc.low %vm488_vm6, %vm487_vm5  ;;  %v409_v29 = vrot.slane %v329_v6, %v408_v13  ;;  %v413_v30 = vrot.slane %v330_v7, %v408_v13  ;;  %v497_v31 = vrot.slane %v329_v6, %v496_v14  ;;  %s304_s10 = scalar_lea.vmem %s1752_s0, %s1138_s24  ;;  %s1301_s24 = smov 17   ;;  %v836_v23 = vld [vmem:[#allocation2 + $0xc] sm:$0xf]  ;;  %v982_v18 = vld [vmem:[%s1757_s5] sm:$0xf] }
  0x18   : > { %380 = vrot.lane.b32.xlu0 %v379_v27, %s1294_s12  ;;  %vm341_vm13 = vmpackc.low %vm1433_vm9, %vm1429_vm8  ;;  %v501_v32 = vrot.slane %v330_v7, %v496_v14  ;;  %v533_v33 = vrot.slane %v329_v6, %v532_v15  ;;  %v537_v34 = vrot.slane %v330_v7, %v532_v15  ;;  %v567_v35 = vrot.slane %v329_v6, %v566_v16  ;;  %v1453_v37 = vld.sshfl [vmem:[%s304_s10] sm:$0x33 pattern:$0x76325410] }
  0x19   : > { %v342_v38 = vsel %vm341_vm13, 65537, %v1293_v4  ;;  %vm452_vm14 = vmpackc.low %vm451_vm11, %vm450_vm10  ;;  %vm414_vm15 = vcmp.eq.s32.totalorder %v409_v29, 1  ;;  %vm415_vm0 = vcmp.eq.s32.totalorder %v413_v30, 1  ;;  %vm502_vm1 = vcmp.eq.s32.totalorder %v497_v31, 1  ;;  %324 = vst [vmem:[#allocation2 + $0x4] sm:$0x33] %v1453_v37 }
  0x1a   : > { %343 = vrot.lane.b32.xlu1 %v342_v38, %s1295_s18  ;;  %v453_v39 = vsel %vm452_vm14, 65537, %v1293_v4  ;;  %vm416_vm2 = vmpackc.low %vm415_vm0, %vm414_vm15  ;;  %vm503_vm3 = vcmp.eq.s32.totalorder %v501_v32, 1  ;;  %vm538_vm4 = vcmp.eq.s32.totalorder %v533_v33, 1  ;;  %vm539_vm5 = vcmp.eq.s32.totalorder %v537_v34, 1 }
  0x1b   : > { %v417_v40 = vsel %vm416_vm2, 65537, %v1293_v4  ;;  %vm504_vm6 = vmpackc.low %vm503_vm3, %vm502_vm1  ;;  %v571_v41 = vrot.slane %v330_v7, %v566_v16  ;;  %vm572_vm7 = vcmp.eq.s32.totalorder %v567_v35, 1  ;;  %vm601_vm8 = vcmp.gt.f32.partialorder %v313_v36, 0.5  ;;  %v493_v35 = vld [vmem:[#allocation2 + $0xc] sm:$0x3] }
  0x1c   : > { %454 = vrot.lane.b32.xlu0 %v453_v39, %s1296_s19  ;;  %v603_v42 = vsel %vm601_vm8, 1, %v1293_v4  ;;  %v607_v43 = vrot.slane %v1414_v8, %v1419_v11  ;;  %v505_v44 = vsel %vm504_vm6, 65537, %v1293_v4  ;;  %vm540_vm9 = vmpackc.low %vm539_vm5, %vm538_vm4  ;;  %vm1766_vm0 = vcmask 908288  }
  0x1d   : > { %vm573_vm10 = vcmp.eq.s32.totalorder %v571_v41, 1  ;;  %v611_v45 = vrot.slane %v603_v42, %v1419_v11  ;;  %v541_v47 = vsel %vm540_vm9, 65537, %v1293_v4  ;;  %vm1771_vm3 = vcmask 924672   ;;  %v529_v11 = vld [vmem:[#allocation2 + $0xc] sm:$0x3]  ;;  %v984_v41 = vld [vmem:[%s1758_s6] sm:$0xff] }
  0x1e   : > { %418 = vrot.lane.b32.xlu1 %v417_v40, %s1297_s20  ;;  %vm574_vm11 = vmpackc.low %vm573_vm10, %vm572_vm7  ;;  %vm612_vm13 = vcmp.eq.s32.totalorder %v607_v43, 1  ;;  %vm1767_vm4 = vcmask 916480   ;;  %vm1769_vm7 = vcmask 1039360   ;;  %vm1773_vm8 = vcmask 121856   ;;  %v563_v43 = vld [vmem:[#allocation2 + $0xc] sm:$0x3] }
  0x1f   : > { %v575_v46 = vsel %vm574_vm11, 65537, %v1293_v4  ;;  %vm613_vm14 = vcmp.eq.s32.totalorder %v611_v45, 1  ;;  %v998_v2 = vcombine.high %v1453_v37, %v1453_v37 }
  0x20   : > { %506 = vrot.lane.b32.xlu0 %v505_v44, %s1298_s21  ;;  %vm614_vm15 = vmpackc.low %vm613_vm14, %vm612_vm13  ;;  %v326_v52 = vld [vmem:[#allocation2 + $0x8] sm:$0x3]  ;;  %v325_v54 = vld [vmem:[#allocation2] sm:$0x33]  ;;  %vm1772_vm13 = vcmask 7168  }
  0x21   : > { %v615_v48 = vsel %vm614_vm15, 65537, %v1293_v4  ;;  %v405_v62 = vld [vmem:[#allocation2 + $0x8] sm:$0x3]  ;;  %v404_v0 = vld [vmem:[#allocation2] sm:$0x33] }
  0x22   : > { %576 = vrot.lane.b32.xlu1 %v575_v46, %s1299_s22  ;;  %v367_v12 = vld [vmem:[#allocation2 + $0x8] sm:$0x3]  ;;  %v366_v13 = vld [vmem:[#allocation2] sm:$0x33] }
  0x23   : > { %v528_v14 = vld [vmem:[#allocation2 + $0x4] sm:$0x33] }
  0x24   : > { %542 = vrot.lane.b32.xlu0 %v541_v47, %s1300_s23  ;;  %v441_v25 = vld [vmem:[#allocation2 + $0x8] sm:$0x3]  ;;  %v440_v26 = vld [vmem:[#allocation2] sm:$0x33] }
  0x25   : > { %v478_v36 = vld [vmem:[#allocation2 + $0x4] sm:$0x33] }
  0x26   : > { %616 = vrot.lane.b32.xlu1 %v615_v48, %s1301_s24  ;;  %v492_v38 = vld [vmem:[#allocation2 + $0x4] sm:$0x33]  ;;  %v490_v39 = vsel %vm1438_vm12, %v478_v36, 0 }
  0x27   : > { %491 = vst [vmem:[#allocation3 + $0x10] sm:$0x33] %v490_v39  ;;  %v562_v48 = vld [vmem:[#allocation2 + $0x4] sm:$0x33] }
  0x8a   : > { %v381_v49 = vpop.permute.xlu0 %380 }
  0x8b   : > { %v382_v59 = vrot.slane %v381_v49, 4 }
  0x8c   : > { %v344_v50 = vpop.permute.xlu1 %343 }
  0x8d   : > { %v345_v51 = vrot.slane %v344_v50, 4  ;;  %v1501_v5 = vsel %vm1767_vm4, %v382_v59, %v381_v49  ;;  %vm1507_vm9 = vcmp.ne.s16.totalorder %v382_v59, 0  ;;  %vm362_vm4 = vcmask 138240  }
  0x8e   : > { %v455_v53 = vpop.permute.xlu0 %454  ;;  %vm1764_vm10 = vcmp.ne.s16.totalorder %v1501_v5, 0  ;;  %v388_v20 = vsel %vm1507_vm9, %v367_v12, 0 }
  0x8f   : > { %v1477_v55 = vsel %vm1766_vm0, %v345_v51, %v344_v50  ;;  %vm1479_vm1 = vcmp.ne.s16.totalorder %v345_v51, 0  ;;  %v456_v6 = vrot.slane %v455_v53, 4  ;;  %v387_v22 = vsel %vm1764_vm10, %v366_v13, 0 }
  0x90   : > { %vm1762_vm2 = vcmp.ne.s16.totalorder %v1477_v55, 0  ;;  %v419_v57 = vpop.permute.xlu1 %418  ;;  %v351_v58 = vsel %vm1479_vm1, %v326_v52, 0  ;;  %v392_v29 = vrot.slane %v388_v20, 6  ;;  %v391_v31 = vrot.slane %v387_v22, 6 }
  0x91   : > { %v420_v60 = vrot.slane %v419_v57, 4  ;;  %356 = vrot.lane.b32.xlu1 %v351_v58, %s1301_s24  ;;  %v350_v61 = vsel %vm1762_vm2, %v325_v54, 0  ;;  %v1513_v15 = vsel %vm1769_vm7, %v456_v6, %v455_v53  ;;  %vm1529_vm15 = vcmp.ne.s16.totalorder %v456_v6, 0  ;;  %v599_v58 = vld [vmem:[#allocation2 + $0xc] sm:$0x3]  ;;  %v642_v6 = vld [vmem:[%s1754_s2] sm:$0xff] }
  0x92   : > { %354 = vrot.lane.b32.xlu0 %v350_v61, %s1301_s24  ;;  %v507_v63 = vpop.permute.xlu0 %506  ;;  %vm400_vm2 = vcmask 130048   ;;  %v462_v32 = vsel %vm1529_vm15, %v441_v25, 0 }
  0x93   : > { %v1491_v1 = vsel %vm1771_vm3, %v420_v60, %v419_v57  ;;  %vm1493_vm5 = vcmp.ne.s16.totalorder %v420_v60, 0  ;;  %v508_v16 = vrot.slane %v507_v63, 4  ;;  %v466_v42 = vrot.slane %v462_v32, 6 }
  0x94   : > { %vm1761_vm6 = vcmp.ne.s16.totalorder %v1491_v1, 0  ;;  %v426_v3 = vsel %vm1493_vm5, %v405_v62, 0  ;;  %v577_v21 = vpop.permute.xlu1 %576  ;;  %v598_v62 = vld [vmem:[#allocation2 + $0x4] sm:$0x33] }
  0x95   : > { %431 = vrot.lane.b32.xlu1 %v426_v3, %s1300_s23  ;;  %v425_v7 = vsel %vm1761_vm6, %v404_v0, 0  ;;  %vm1765_vm6 = vcmp.ne.s16.totalorder %v1513_v15, 0  ;;  %v1539_v27 = vsel %vm1772_vm13, %v508_v16, %v507_v63  ;;  %v578_v30 = vrot.slane %v577_v21, 4  ;;  %v804_v0 = vld [vmem:[#allocation2 + $0xc] sm:$0xf] }
  0x96   : > { %429 = vrot.lane.b32.xlu0 %v425_v7, %s1300_s23  ;;  %v543_v8 = vpop.permute.xlu0 %542  ;;  %v461_v33 = vsel %vm1765_vm6, %v440_v26, 0  ;;  %vm1768_vm10 = vcmp.ne.s16.totalorder %v1539_v27, 0 }
  0x97   : > { %v544_v10 = vrot.slane %v543_v8, 4  ;;  %v1555_v40 = vsel %vm400_vm2, %v578_v30, %v577_v21  ;;  %vm1557_vm6 = vcmp.ne.s16.totalorder %v578_v30, 0  ;;  %v465_v44 = vrot.slane %v461_v33, 6 }
  0x98   : > { %v617_v46 = vpop.permute.xlu1 %616  ;;  %v512_v47 = vsel %vm1768_vm10, %v492_v38, 0  ;;  %vm1770_vm0 = vcmp.ne.s16.totalorder %v1555_v40, 0  ;;  %v583_v49 = vsel %vm1557_vm6, %v563_v43, 0 }
  0x99   : > { %v1516_v17 = vsel %vm1773_vm8, %v544_v10, %v543_v8  ;;  %vm1518_vm11 = vcmp.ne.s16.totalorder %v544_v10, 0  ;;  %v618_v51 = vrot.slane %v617_v46, 4  ;;  %v516_v52 = vrot.slane %v512_v47, 6 }
  0x9a   : > { %vm1763_vm14 = vcmp.ne.s16.totalorder %v1516_v17, 0  ;;  %v549_v19 = vsel %vm1518_vm11, %v529_v11, 0  ;;  %v582_v53 = vsel %vm1770_vm0, %v562_v48, 0  ;;  %v587_v54 = vrot.slane %v583_v49, 6 }
  0x9b   : > { %554 = vrot.lane.b32.xlu1 %v549_v19, %s1297_s20  ;;  %v548_v24 = vsel %vm1763_vm14, %v528_v14, 0  ;;  %vm1545_vm14 = vcmp.ne.s16.totalorder %v508_v16, 0  ;;  %v1575_v57 = vsel %vm362_vm4, %v618_v51, %v617_v46  ;;  %vm1577_vm10 = vcmp.ne.s16.totalorder %v618_v51, 0 }
  0x9c   : > { %552 = vrot.lane.b32.xlu0 %v548_v24, %s1297_s20  ;;  %v513_v45 = vsel %vm1545_vm14, %v493_v35, 0  ;;  %v586_v60 = vrot.slane %v582_v53, 6  ;;  %vm620_vm7 = vcmp.ne.s16.totalorder %v1575_v57, 0  ;;  %v623_v61 = vsel %vm1577_vm10, %v599_v58, 0 }
  0x9d   : > { %v517_v50 = vrot.slane %v513_v45, 6  ;;  %v622_v63 = vsel %vm620_vm7, %v598_v62, 0  ;;  %v806_v3 = vsel %vm1545_vm14, %v804_v0, 0  ;;  %vm360_vm0 = vcmask 1043456  }
  0x9e   : > { %vm1798_vm14 = vcmask 1039360  }
  0x9f   : > { %395 = vrot.lane.b32.xlu1 %v392_v29, %s1299_s22 }
  0xa0   : > { %393 = vrot.lane.b32.xlu0 %v391_v31, %s1299_s22 }
  0xa3   : > { %469 = vrot.lane.b32.xlu1 %v466_v42, %s1298_s21 }
  0xa4   : > { %467 = vrot.lane.b32.xlu0 %v465_v44, %s1298_s21 }
  0xa7   : > { %520 = vrot.lane.b32.xlu1 %v517_v50, %s1296_s19 }
  0xa8   : > { %518 = vrot.lane.b32.xlu0 %v516_v52, %s1296_s19 }
  0xab   : > { %590 = vrot.lane.b32.xlu1 %v587_v54, %s1294_s12 }
  0xac   : > { %588 = vrot.lane.b32.xlu0 %v586_v60, %s1294_s12 }
  0xaf   : > { %628 = vrot.lane.b32.xlu1 %v623_v61, %s1295_s18 }
  0xb0   : > { %626 = vrot.lane.b32.xlu0 %v622_v63, %s1295_s18 }
  0xb3   : > { %811 = vrot.lane.b32.xlu1 %v806_v3, %s1296_s19 }
  0xb4   : > { %645 = vperm.xlu0 %1219, %v642_v6  }
 0x103   : > { %v357_v7 = vpop.permute.xlu1 %356 }
 0x104   : > { %v359_v8 = vrot.slane %v357_v7, 4  ;;  %v355_v10 = vpop.permute.xlu0 %354 }
 0x105   : > { %v358_v11 = vrot.slane %v355_v10, 4 }
 0x107   : > { %v361_v12 = vsel %vm360_vm0, %v358_v11, %v359_v8  ;;  %v432_v13 = vpop.permute.xlu1 %431 }
 0x108   : > { %v363_v14 = vsel %vm362_vm4, %v355_v10, %v361_v12  ;;  %v434_v16 = vrot.slane %v432_v13, 4  ;;  %v430_v19 = vpop.permute.xlu0 %429 }
 0x109   : > { %365 = vst [vmem:[#allocation3] sm:$0x33] %v363_v14  ;;  %v433_v20 = vrot.slane %v430_v19, 4 }
 0x10b   : > { %v435_v21 = vsel %vm360_vm0, %v433_v20, %v434_v16 }
 0x10c   : > { %v437_v22 = vsel %vm1773_vm8, %v430_v19, %v435_v21  ;;  %v636_v21 = vld [vmem:[%s1753_s1] sm:$0xf]  ;;  %vm1803_vm8 = vcmp.ne.s16.totalorder %v1491_v1, 0 }
 0x10d   : > { %439 = vst [vmem:[#allocation3 + $0x8] sm:$0x33] %v437_v22  ;;  %v555_v24 = vpop.permute.xlu1 %554 }
 0x10e   : > { %v557_v25 = vrot.slane %v555_v24, 4  ;;  %v553_v26 = vpop.permute.xlu0 %552 }
 0x10f   : > { %v556_v29 = vrot.slane %v553_v26, 4 }
 0x111   : > { %v558_v30 = vsel %vm360_vm0, %v556_v29, %v557_v25  ;;  %v396_v31 = vpop.permute.xlu1 %395 }
 0x112   : > { %v559_v32 = vsel %vm1771_vm3, %v553_v26, %v558_v30  ;;  %v398_v33 = vrot.slane %v396_v31, 4  ;;  %v394_v34 = vpop.permute.xlu0 %393  ;;  %vm1799_vm3 = vcmask 916480  }
 0x113   : > { %561 = vst [vmem:[#allocation3 + $0x18] sm:$0x33] %v559_v32  ;;  %v397_v35 = vrot.slane %v394_v34, 4 }
 0x115   : > { %v399_v36 = vsel %vm360_vm0, %v397_v35, %v398_v33  ;;  %v470_v38 = vpop.permute.xlu1 %469 }
 0x116   : > { %v401_v39 = vsel %vm400_vm2, %v394_v34, %v399_v36  ;;  %v472_v42 = vrot.slane %v470_v38, 4  ;;  %v468_v43 = vpop.permute.xlu0 %467 }
 0x117   : > { %403 = vst [vmem:[#allocation3] sm:$0xcc] %v401_v39  ;;  %v471_v44 = vrot.slane %v468_v43, 4 }
 0x119   : > { %v473_v45 = vsel %vm360_vm0, %v471_v44, %v472_v42  ;;  %v521_v46 = vpop.permute.xlu1 %520 }
 0x11a   : > { %v475_v47 = vsel %vm1772_vm13, %v468_v43, %v473_v45  ;;  %v523_v48 = vrot.slane %v521_v46, 4  ;;  %v519_v49 = vpop.permute.xlu0 %518  ;;  %vm677_vm13 = vcmask 1041408  }
 0x11b   : > { %477 = vst [vmem:[#allocation3 + $0x8] sm:$0xcc] %v475_v47  ;;  %v522_v50 = vrot.slane %v519_v49, 4 }
 0x11d   : > { %v524_v51 = vsel %vm360_vm0, %v522_v50, %v523_v48  ;;  %v591_v52 = vpop.permute.xlu1 %590 }
 0x11e   : > { %v525_v53 = vsel %vm1798_vm14, %v519_v49, %v524_v51  ;;  %v593_v54 = vrot.slane %v591_v52, 4  ;;  %v589_v58 = vpop.permute.xlu0 %588  ;;  %vm1800_vm14 = vcmask 908288   ;;  %v877_v49 = vld [vmem:[%s1756_s4] sm:$0xff] }
 0x11f   : > { %527 = vst [vmem:[#allocation3 + $0x10] sm:$0xcc] %v525_v53  ;;  %v592_v60 = vrot.slane %v589_v58, 4 }
 0x121   : > { %v594_v61 = vsel %vm360_vm0, %v592_v60, %v593_v54  ;;  %v629_v62 = vpop.permute.xlu1 %628 }
 0x122   : > { %v595_v63 = vsel %vm1799_vm3, %v589_v58, %v594_v61  ;;  %v631_v0 = vrot.slane %v629_v62, 4  ;;  %v627_v3 = vpop.permute.xlu0 %626  ;;  %v1221_v6 = vld [vmem:[#allocation3 + $0x4] ss:$8 sps:$4 sm:$0xff]   ;;  %v1223_v7 = vld [vmem:[#allocation3] ss:$8 sps:$4 sm:$0xff]   ;;  %vm673_vm3 = vcmask 293888  }
 0x123   : > { %597 = vst [vmem:[#allocation3 + $0x18] sm:$0xcc] %v595_v63  ;;  %v630_v8 = vrot.slane %v627_v3, 4  ;;  %684 = vmatprep.subr.bf16.mxu0 %v1221_v6 }
 0x124   : > { %685 = vmatpush1.bf16.msra.mxu0 %v1223_v7 }
 0x125   : > { %v632_v10 = vsel %vm360_vm0, %v630_v8, %v631_v0  ;;  %v812_v50 = vpop.permute.xlu1 %811 }
 0x126   : > { %v633_v11 = vsel %vm1800_vm14, %v627_v3, %v632_v10  ;;  %vm1801_vm14 = vcmp.ne.s16.totalorder %v1501_v5, 0  ;;  %v814_v7 = vrot.slane %v812_v50, 4 }
 0x127   : > { %635 = vst [vmem:[#allocation3 + $0x20] sm:$0x33] %v633_v11 }
 0x12a   : > { %v1224_v12 = vld [vmem:[#allocation3 + $0x14] ss:$8 sps:$4 sm:$0xff]   ;;  %v1226_v13 = vld [vmem:[#allocation3 + $0x10] ss:$8 sps:$4 sm:$0xff]  }
 0x12b   : > { %686 = vmatprep.subr.bf16.mxu0 %v1224_v12 }
 0x12c   : > { %687 = vmatpush1.bf16.msra.mxu0 %v1226_v13 }
 0x12e   : > { %v641_v14 = vld [vmem:[#allocation3 + $0x20] sm:$0x33] }
 0x12f   : > { %v1145_v16 = vcombine.high %v641_v14, %v641_v14  ;;  %v1144_v19 = vcombine.low %v641_v14, %v641_v14 }
 0x131   : > { %1146 = vmatprep.subr.msk.bf16.mxu0 %vm677_vm13, %v1145_v16  ;;  %v679_v20 = vsel %vm677_vm13, %v1144_v19, 0 }
 0x132   : > { %689 = vmatpush1.bf16.msra.mxu0 %v679_v20 }
 0x133   : > { %v646_v22 = vpop.permute.xlu0 %645  ;;  %1162 = vmatprep.subr.msk.bf16.mxu0 %vm677_vm13, %v998_v2 }
 0x135   : > { %1147 = vmatmul.mubr.msk.bf16.vlgmr.msra.gmra.mrb[0].mxu0 %vm673_vm3, %v636_v21  ;;  %vm1802_vm3 = vcmp.ne.s16.totalorder %v1477_v55, 0 }
 0x136   : > { %1041 = vmatprep.mubr.bf16.mxu0 %v1293_v4 }
 0x208   : > { %v718_v24 = vpop.f32.mrb[0].mxu0 }
 0x209   : > { %v719_v25 = vadd.f32 %v718_v24, %v646_v22  ;;  %v720_v26 = vpop.f32.mrb[1].mxu0 }
 0x20a   : > { %v721_v29 = vadd.f32 %v720_v26, %v646_v22  ;;  %v722_v30 = vpop.f32.mrb[2].mxu0 }
 0x20b   : > { %v725_v31 = vmax.f32 %v719_v25, 0.0  ;;  %v723_v32 = vpop.f32.mrb[3].mxu0 }
 0x20c   : > { %v726_v33 = vmax.f32 %v721_v29, 0.0 }
 0x20e   : > { %v1169_v34 = vpack.c.bf16 %v726_v33, %v725_v31 }
 0x210   : > { %735 = vst [vmem:[#allocation2 + $0x4] sm:$0xff] %v1169_v34  ;;  %v1620_v35 = vsel %vm1438_vm12, %v1169_v34, 0  ;;  %vm1804_vm12 = vcmp.ne.s16.totalorder %v1513_v15, 0  ;;  %v853_v48 = vsel %vm620_vm7, %v1169_v34, 0  ;;  %vm1811_vm7 = vcmask 924672  }
 0x211   : > { %802 = vst [vmem:[#allocation3 + $0x20] sm:$0xff] %v1620_v35 }
 0x217   : > { %v752_v36 = vld [vmem:[#allocation2] sm:$0xff]  ;;  %v737_v39 = vld [vmem:[#allocation2 + $0x8] sm:$0xf] }
 0x218   : > { %v754_v4 = vsel %vm1801_vm14, %v752_v36, 0  ;;  %v738_v38 = vsel %vm1802_vm3, %v752_v36, 0  ;;  %v770_v42 = vsel %vm1803_vm8, %v752_v36, 0  ;;  %v739_v28 = vsel %vm1479_vm1, %v737_v39, 0  ;;  %v753_v5 = vld [vmem:[#allocation2 + $0x8] sm:$0xf] }
 0x219   : > { %758 = vrot.lane.b32.xlu0 %v754_v4, %s1299_s22  ;;  %742 = vrot.lane.b32.xlu1 %v738_v38, %s1301_s24  ;;  %v786_v55 = vsel %vm1804_vm12, %v752_v36, 0  ;;  %v755_v43 = vsel %vm1507_vm9, %v753_v5, 0  ;;  %v769_v1 = vld [vmem:[#allocation2 + $0x8] sm:$0xf]  ;;  %vm1805_vm8 = vcmp.ne.s16.totalorder %v1539_v27, 0  ;;  %vm1806_vm1 = vcmp.ne.s16.totalorder %v1516_v17, 0 }
 0x21a   : > { %v805_v56 = vsel %vm1805_vm8, %v1169_v34, 0  ;;  %v771_v44 = vsel %vm1493_vm5, %v769_v1, 0  ;;  %v785_v15 = vld [vmem:[#allocation2 + $0x8] sm:$0xf]  ;;  %v821_v9 = vsel %vm1806_vm1, %v1169_v34, 0  ;;  %vm1807_vm5 = vcmp.ne.s16.totalorder %v1555_v40, 0 }
 0x21b   : > { %v787_v45 = vsel %vm1529_vm15, %v785_v15, 0  ;;  %v820_v27 = vld [vmem:[#allocation2 + $0xc] sm:$0xf]  ;;  %v837_v46 = vsel %vm1807_vm5, %v1169_v34, 0  ;;  %v1004_v17 = vsel %vm677_vm13, %v1453_v37, 0  ;;  %v838_v40 = vsel %vm1557_vm6, %v836_v23, 0 }
 0x21c   : > { %v822_v47 = vsel %vm1518_vm11, %v820_v27, 0  ;;  %1010 = vmatpush1.bf16.msra.mxu0 %v1004_v17  ;;  %vm999_vm9 = vcmask 31744   ;;  %v852_v37 = vld [vmem:[#allocation2 + $0xc] sm:$0xf]  ;;  %vm1809_vm6 = vcmask 121856   ;;  %vm1813_vm11 = vcmask 908288  }
 0x21d   : > { %774 = vrot.lane.b32.xlu0 %v770_v42, %s1300_s23  ;;  %744 = vrot.lane.b32.xlu1 %v739_v28, %s1301_s24  ;;  %v854_v57 = vsel %vm1577_vm10, %v852_v37, 0  ;;  %vm1812_vm10 = vcmask 916480   ;;  %vm928_vm13 = vcmask 588800   ;;  %s297_s24 = sand.u32 1, %s1283_s28  }
 0x21e   : > { %s1136_s25 = sshll.u32 %s297_s24, 4 }
 0x21f   : > { %1163 = vmatmul.mubr.msk.bf16.vlgmr.msra.gmra.mrb[4].mxu0 %vm999_vm9, %v982_v18  ;;  %v867_v18 = vld [vmem:[%s1755_s3] sm:$0xf]  ;;  %s299_s10 = scalar_lea.vmem [#allocation4], %s1136_s25 }
 0x220   : > { %s1073_s13 = sshll.u32 %s299_s10, 4  ;;  %s1712_s13 = int_to_ptr.vmem [resolvable:$true] %s1073_s13 }
 0x221   : > { %790 = vrot.lane.b32.xlu0 %v786_v55, %s1298_s21  ;;  %760 = vrot.lane.b32.xlu1 %v755_v43, %s1299_s22  ;;  %s1229_s22 = scalar_lea.vmem %s1712_s13, 256 }
 0x222   : > { %p1230_p11 = scmp.ne.s32.totalorder %s1712_s13, %s1229_s22 }
 0x224   : > { %p1231_p12 = pnand %p1230_p11, %p1386_p5 }
 0x225   : > { %809 = vrot.lane.b32.xlu0 %v805_v56, %s1296_s19  ;;  %776 = vrot.lane.b32.xlu1 %v771_v44, %s1300_s23  ;;  %s1233_s23 = sshll.u32 %s1302_s9, 4  ;;  %s1234_s23 = int_to_ptr.vmem [resolvable:$false] %s1233_s23 }
 0x226   : > { %p1232_p13 = pneg %p1231_p12  ;;  %p1236_p0 = scmp.lt.s32.totalorder %s1712_s13, %s1234_s23 }
 0x229   : > { %825 = vrot.lane.b32.xlu0 %v821_v9, %s1297_s20  ;;  %792 = vrot.lane.b32.xlu1 %v787_v45, %s1298_s21  ;;  %s1059_s21 = scalar_lea.sflag [#allocation5], %s297_s24 }
 0x22d   : > { %841 = vrot.lane.b32.xlu0 %v837_v46, %s1294_s12  ;;  %827 = vrot.lane.b32.xlu1 %v822_v47, %s1297_s20  ;;  %s1710_s20 = scalar_lea.hbm %s1760_s8, %s1170_s26 }
 0x231   : > { %857 = vrot.lane.b32.xlu0 %v853_v48, %s1295_s18  ;;  %843 = vrot.lane.b32.xlu1 %v838_v40, %s1294_s12  ;;  %s1235_s12 = scalar_lea.vmem %s1234_s23, 512 }
 0x232   : > { %p1237_p1 = scmp.lt.s32.totalorder %s1235_s12, %s1229_s22 }
 0x234   : > { %p1238_p2 = por %p1237_p1, %p1236_p0 }
 0x235   : > { %880 = vperm.xlu0 %1219, %v877_v49   ;;  %859 = vrot.lane.b32.xlu1 %v854_v57, %s1295_s18 }
 0x236   : > { %p1239_p3 = pnand %p1238_p2, %p1232_p13 }
 0x239   : > { %987 = vperm.xlu1 %1220, %v984_v41  }
 0x28b   : > { %v759_v51 = vpop.permute.xlu0 %758  ;;  %v743_v52 = vpop.permute.xlu1 %742 }
 0x28c   : > { %v746_v58 = vrot.slane %v743_v52, 4  ;;  %v762_v0 = vrot.slane %v759_v51, 4 }
 0x28f   : > { %v775_v53 = vpop.permute.xlu0 %774  ;;  %v745_v54 = vpop.permute.xlu1 %744 }
 0x290   : > { %v747_v60 = vrot.slane %v745_v54, 4  ;;  %v778_v8 = vrot.slane %v775_v53, 4 }
 0x292   : > { %v748_v61 = vsel %vm360_vm0, %v746_v58, %v747_v60 }
 0x293   : > { %v749_v59 = vsel %vm362_vm4, %v743_v52, %v748_v61  ;;  %v791_v62 = vpop.permute.xlu0 %790  ;;  %v761_v63 = vpop.permute.xlu1 %760  ;;  %vm1808_vm4 = vcmask 1039360  }
 0x294   : > { %751 = vst [vmem:[#allocation3] sm:$0xff] %v749_v59  ;;  %v763_v3 = vrot.slane %v761_v63, 4  ;;  %v794_v29 = vrot.slane %v791_v62, 4 }
 0x296   : > { %v764_v6 = vsel %vm360_vm0, %v762_v0, %v763_v3 }
 0x297   : > { %v765_v10 = vsel %vm400_vm2, %v759_v51, %v764_v6  ;;  %v810_v11 = vpop.permute.xlu0 %809  ;;  %v777_v12 = vpop.permute.xlu1 %776  ;;  %vm1810_vm2 = vcmask 7168  }
 0x298   : > { %767 = vst [vmem:[#allocation3 + $0x8] sm:$0xff] %v765_v10  ;;  %v813_v13 = vrot.slane %v810_v11, 4  ;;  %v779_v14 = vrot.slane %v777_v12, 4  ;;  %v1150_v16 = vcombine.high %v749_v59, %v765_v10  ;;  %v1149_v19 = vcombine.low %v749_v59, %v765_v10 }
 0x29a   : > { %v815_v20 = vsel %vm360_vm0, %v813_v13, %v814_v7  ;;  %v780_v21 = vsel %vm360_vm0, %v778_v8, %v779_v14  ;;  %939 = vmatprep.subr.bf16.mxu1 %v1150_v16 }
 0x29b   : > { %v816_v22 = vsel %vm1808_vm4, %v810_v11, %v815_v20  ;;  %v781_v24 = vsel %vm1809_vm6, %v775_v53, %v780_v21  ;;  %v826_v25 = vpop.permute.xlu0 %825  ;;  %v793_v26 = vpop.permute.xlu1 %792  ;;  %940 = vmatpush1.bf16.msra.mxu1 %v1149_v19 }
 0x29c   : > { %783 = vst [vmem:[#allocation3 + $0x10] sm:$0xff] %v781_v24  ;;  %v795_v30 = vrot.slane %v793_v26, 4  ;;  %v829_v36 = vrot.slane %v826_v25, 4  ;;  %v1154_v28 = vcombine.high %v1620_v35, %v816_v22  ;;  %v1153_v44 = vcombine.low %v1620_v35, %v816_v22 }
 0x29e   : > { %v796_v31 = vsel %vm360_vm0, %v794_v29, %v795_v30 }
 0x29f   : > { %v797_v32 = vsel %vm1810_vm2, %v791_v62, %v796_v31  ;;  %v842_v33 = vpop.permute.xlu0 %841  ;;  %v828_v34 = vpop.permute.xlu1 %827 }
 0x2a0   : > { %799 = vst [vmem:[#allocation3 + $0x18] sm:$0xff] %v797_v32  ;;  %v830_v4 = vrot.slane %v828_v34, 4  ;;  %v1152_v38 = vcombine.high %v781_v24, %v797_v32  ;;  %v1151_v39 = vcombine.low %v781_v24, %v797_v32  ;;  %v845_v43 = vrot.slane %v842_v33, 4 }
 0x2a2   : > { %v831_v42 = vsel %vm360_vm0, %v829_v36, %v830_v4  ;;  %941 = vmatprep.subr.bf16.mxu1 %v1152_v38 }
 0x2a3   : > { %v832_v5 = vsel %vm1811_vm7, %v826_v25, %v831_v42  ;;  %v844_v55 = vpop.permute.xlu1 %843  ;;  %942 = vmatpush1.bf16.msra.mxu1 %v1151_v39  ;;  %v858_v56 = vpop.permute.xlu0 %857 }
 0x2a4   : > { %v846_v1 = vrot.slane %v844_v55, 4  ;;  %943 = vmatprep.subr.bf16.mxu1 %v1154_v28  ;;  %v861_v27 = vrot.slane %v858_v56, 4 }
 0x2a6   : > { %v847_v15 = vsel %vm360_vm0, %v845_v43, %v846_v1 }
 0x2a7   : > { %v848_v9 = vsel %vm1812_vm10, %v842_v33, %v847_v15  ;;  %v860_v45 = vpop.permute.xlu1 %859  ;;  %944 = vmatpush1.bf16.msra.mxu1 %v1153_v44 }
 0x2a8   : > { %v862_v2 = vrot.slane %v860_v45, 4  ;;  %v1156_v46 = vcombine.high %v832_v5, %v848_v9  ;;  %v1155_v47 = vcombine.low %v832_v5, %v848_v9 }
 0x2aa   : > { %v863_v17 = vsel %vm360_vm0, %v861_v27, %v862_v2  ;;  %945 = vmatprep.subr.bf16.mxu1 %v1156_v46 }
 0x2ab   : > { %v864_v23 = vsel %vm1813_vm11, %v858_v56, %v863_v17  ;;  %946 = vmatpush1.bf16.msra.mxu1 %v1155_v47 }
 0x2ac   : > { %v1158_v48 = vcombine.high %v864_v23, %v864_v23  ;;  %v1157_v40 = vcombine.low %v864_v23, %v864_v23 }
 0x2ae   : > { %1159 = vmatprep.subr.msk.bf16.mxu1 %vm360_vm0, %v1158_v48  ;;  %v934_v35 = vsel %vm360_vm0, %v1157_v40, 0 }
 0x2af   : > { %948 = vmatpush1.bf16.msra.mxu1 %v934_v35 }
 0x2b2   : > { %1160 = vmatmul.mubr.msk.bf16.vlgmr.msra.gmra.mrb[0].mxu1 %vm928_vm13, %v867_v18 }
 0x2b4   : > { %v881_v53 = vpop.permute.xlu0 %880 }
 0x2b8   : > { %v988_v50 = vpop.permute.xlu1 %987 }
 0x2f2   : > { %v1043_v37 = vpop.f32.mrb[4].mxu0 }
 0x2f3   : > { %v1045_v49 = vpop.f32.mrb[5].mxu0  ;;  %v1044_v51 = vadd.f32 %v1043_v37, %v988_v50 }
 0x2f4   : > { %v1047_v57 = vpop.f32.mrb[6].mxu0  ;;  %v1046_v52 = vadd.f32 %v1045_v49, %v988_v50 }
 0x2f5   : > { %v1048_v41 = vpop.f32.mrb[7].mxu0  ;;  %v1050_v60 = vmax.f32 %v1044_v51, 0.0 }
 0x2f6   : > { %v1051_v59 = vmax.f32 %v1046_v52, 0.0 }
 0x385   : > { %v973_v54 = vpop.f32.mrb[0].mxu1 }
 0x386   : > { %v974_v58 = vadd.f32 %v973_v54, %v881_v53  ;;  %v975_v61 = vpop.f32.mrb[1].mxu1 }
 0x387   : > { %v976_v62 = vadd.f32 %v975_v61, %v881_v53  ;;  %v977_v63 = vpop.f32.mrb[2].mxu1 }
 0x388   : > { %v980_v0 = vmax.f32 %v974_v58, 0.0  ;;  %v978_v3 = vpop.f32.mrb[3].mxu1 }
 0x389   : > { %v981_v6 = vmax.f32 %v976_v62, 0.0 }
 0x38a   : > { %v1052_v7 = vadd.f32 %v1050_v60, %v980_v0 }
 0x38b   : > { %v1053_v8 = vadd.f32 %v1051_v59, %v981_v6 }
 0x38c   : > { %v1054_v10 = vmax.f32 %v1052_v7, 0.0 }
 0x38d   : > { %v1055_v11 = vmax.f32 %v1053_v8, 0.0 }
 0x38e   : > { %1056 = vst [vmem:[%s299_s10] sm:$0xff] %v1054_v10 }
 0x38f   : > { %1057 = vst [vmem:[%s299_s10 + $0x8] sm:$0xff] %v1055_v11 }
 0x390   : > { %1242 = shalt.err (!%p1239_p3)
}
 0x391   : > { %s1243_s18 = scalar_lea.hbm %s1710_s20, 256  ;;  %s1247_s26 = scalar_lea.hbm %s1760_s8, 512 }
 0x392   : > { %p1244_p4 = scmp.ne.s32.totalorder %s1710_s20, %s1243_s18  ;;  %p1248_p9 = scmp.lt.u32.totalorder %s1710_s20, %s1760_s8 }
 0x393   : > { %p1249_p10 = scmp.lt.u32.totalorder %s1247_s26, %s1243_s18  ;;  %p1251_p12 = scmp.lt.u32.totalorder %s1243_s18, %s1710_s20 }
 0x394   : > { %p1245_p7 = pnand %p1244_p4, %p1386_p5 }
 0x395   : > { %p1250_p11 = por %p1249_p10, %p1248_p9 }
 0x396   : > { %p1246_p8 = pneg %p1245_p7 }
 0x397   : > { %p1252_p13 = por %p1251_p12, %p1250_p11 }
 0x399   : > { %p1253_p0 = pnand %p1252_p13, %p1246_p8 }
 0x39b   : > { %1256 = shalt.err (!%p1253_p0)
}
 0x39c   : > { %1171 = dma.vmem_to_hbm [thread:$0]  (%p1386_p5), %s1712_s13, 256, %s1710_s20, %s1059_s21  }
 0x39d PF: > { %p1177_p1 = scmp.ge.s32.totalorder %s1291_s30, 2  ;;  %s1085_s19 = sand.u32 1, %s1279_s27  }
 0x39e   : > { %s1086_s22 = scalar_lea.sflag [#allocation5], %s1085_s19 }
 0x39f   : > { %p1174_p2 = pnand %p1177_p1, %p1390_p6 }
 0x3a1   : > { %1274 = dma.done.wait (!%p1174_p2), %s1086_s22, 256  }
 0x3a2   : > { %1276 = vsyncadd (!%p1174_p2), %s1086_s22, 4294967040  ;;  %p18_p3 = scmp.ge.s32.totalorder %s1373_s11, 4   ;;  %s1814_s27 = smov %s1283_s28 }
 0x3a3   : > { %s1815_s28 = smov %s1287_s29  ;;  %s1816_s29 = smov %s1384_s14 }
 0x3a4   : > { %s1817_s30 = smov %s1373_s11  ;;  %20 = sbr.rel (!%p18_p3) target bundleno = 3 (0x3), region = 87 }
 0x3ab   :  { %1091 = vsyncpa [#allocation5], 1 }
 0x3ac   :  { %1093 = vsyncpa [#allocation5 + $0x1], 1 }

</bundles_post_ra>
